<compile_context>
chip_gen: v7x
topology: tpu7x:2x2x1
jax: 0.10.0
libtpu: 0.0.40
codegen_flags: <defaults>
</compile_context>

<pallas_src>
import functools

import jax
import jax.numpy as jnp
from jax.experimental import pallas as pl
from jax.experimental.pallas import tpu as pltpu


def _round_up(x, m):
    return ((x + m - 1) // m) * m


# -----------------------------------------------------------------------------
# One-time feature / hardware detection (NOT wrapped around the pallas_call).
# -----------------------------------------------------------------------------
def _detect_buffered():
    """Return pl.Buffered if BlockSpec(pipeline_mode=...) is supported, else None."""
    buffered = getattr(pl, "Buffered", None)
    if buffered is None:
        return None
    try:
        pl.BlockSpec((8, 128), lambda i: (i, 0), pipeline_mode=buffered(1))
    except Exception:   # import-time probe only; scoped away from the real call
        return None
    return buffered


_BUFFERED = _detect_buffered()


def _vmem_capacity_bytes():
    try:
        return int(pltpu.get_tpu_info().vmem_capacity_bytes)
    except Exception:
        return 64 * 1024 * 1024   # conservative (v7x-sized) fallback


# -----------------------------------------------------------------------------
# Kernel
# -----------------------------------------------------------------------------
def _one_layer_act_kernel(x_ref, w_ref, b_ref, o_ref, *, activation):
    x = x_ref[...]
    if x.dtype != w_ref.dtype:                       # defensive; normally bf16 already
        x = x.astype(w_ref.dtype)
    # MXU matmul: bf16 operands, f32 accumulation.
    y = jnp.dot(x, w_ref[...], preferred_element_type=jnp.float32)
    y = y + b_ref[...]                               # [1, tile_n] broadcast over rows
    if activation in ("swish", "silu"):
        y = y * jax.nn.sigmoid(y)                    # sigmoid on EUP, mul on VPU
    elif activation == "relu":
        y = jnp.maximum(y, 0.0)
    elif activation == "sigmoid":
        y = jax.nn.sigmoid(y)
    elif activation is not None:
        raise ValueError(f"unknown activation {activation!r}")
    o_ref[...] = y.astype(o_ref.dtype)


# -----------------------------------------------------------------------------
# Wrapper
# -----------------------------------------------------------------------------
def linear_activation_pallas(x, w_t, bias2d, out_dim, *, activation="swish",
                             out_dtype=None, tile_m=None):
    """activation(x @ w_t + bias2d)[:, :out_dim].

    x:       [n, in_dim]           (ideally bf16)
    w_t:     [in_dim, out_padded]  (bf16, out_padded % 128 == 0)
    bias2d:  [1, out_padded]       (f32)
    Returns  [n, out_dim] in out_dtype (default: x.dtype).
    """
    n, in_dim = x.shape
    in_dim_w, out_padded = w_t.shape
    assert in_dim == in_dim_w
    assert out_padded % 128 == 0, "pad out_dim to a multiple of 128 lanes"
    assert bias2d.shape == (1, out_padded)
    assert out_dim <= out_padded
    out_dtype = x.dtype if out_dtype is None else out_dtype

    x_itemsize = jnp.dtype(x.dtype).itemsize
    w_itemsize = jnp.dtype(w_t.dtype).itemsize
    o_itemsize = jnp.dtype(out_dtype).itemsize

    # ---- generation-aware VMEM budget --------------------------------------
    vmem_cap = _vmem_capacity_bytes()          # 64 MiB (v7x) / 128 MiB (v5e/v6e)
    budget = (vmem_cap * 3) // 4               # ~25% headroom for Mosaic scratch

    # ---- tile_m (clamped jointly with in_dim) -------------------------------
    tile_m_auto = tile_m is None
    if tile_m_auto:
        tile_m = min(512, _round_up(n, 16))
        # keep the double-buffered x tile under ~1/4 of the budget (large in_dim)
        while tile_m > 256 and 2 * tile_m * in_dim * x_itemsize > budget // 4:
            tile_m //= 2
    else:
        tile_m = min(_round_up(tile_m, 16), _round_up(n, 16))
    tile_m = max(16, _round_up(tile_m, 16))

    # ---- tile_n from the VMEM actually left over ----------------------------
    remaining = max(budget - 2 * tile_m * in_dim * x_itemsize, 0)
    whole_w_single = in_dim * out_padded * w_itemsize + out_padded * 4
    out_foot_full = 2 * tile_m * out_padded * o_itemsize
    fits_double = 2 * whole_w_single + out_foot_full <= remaining
    fits_single = whole_w_single + out_foot_full <= remaining
    if fits_double or (fits_single and _BUFFERED is not None):
        tile_n = out_padded
        use_single_buffer_w = (not fits_double) and _BUFFERED is not None
    else:
        # Solve: 2*in_dim*tile_n*w + 2*tile_m*tile_n*o + 2*tile_n*4 <= remaining
        denom = 2 * (in_dim * w_itemsize + tile_m * o_itemsize + 4)
        tile_n = (remaining // denom) // 128 * 128
        if tile_n >= 256:
            tile_n = tile_n // 256 * 256       # 256-align for v6e/v7x MXU
        tile_n = int(min(max(tile_n, 128), out_padded))
        use_single_buffer_w = False
    grid_n = pl.cdiv(out_dim, tile_n)

    # ---- guarantee >=2 grid steps so both v7x TensorCores get work ----------
    grid_m = pl.cdiv(n, tile_m)
    if tile_m_auto and grid_m * grid_n == 1 and n >= 256:
        tile_m = max(128, _round_up(_round_up(n, 16) // 2, 16))
        grid_m = pl.cdiv(n, tile_m)

    invariant_w = grid_n == 1
    apply_single = invariant_w and use_single_buffer_w and _BUFFERED is not None
    wb_kwargs = {"pipeline_mode": _BUFFERED(1)} if apply_single else {}
    n_w_bufs = 1 if apply_single else 2

    # ---- VMEM limit + cost hint ---------------------------------------------
    footprint = (2 * tile_m * in_dim * x_itemsize
                 + n_w_bufs * (in_dim * tile_n * w_itemsize + tile_n * 4)
                 + 2 * tile_m * tile_n * o_itemsize)
    vmem_limit = int(min(max(2 * footprint, 32 * 1024 * 1024), budget))

    flops = 2 * n * in_dim * out_padded
    transcendentals = n * out_dim if activation in ("swish", "silu", "sigmoid") else 0
    # With M innermost, W is read from HBM once; x is re-read once per N tile.
    bytes_accessed = (grid_n * n * in_dim * x_itemsize
                      + in_dim * out_padded * w_itemsize
                      + out_padded * 4
                      + n * out_dim * o_itemsize)
    cost = pl.CostEstimate(flops=flops, transcendentals=transcendentals,
                           bytes_accessed=bytes_accessed)

    # TODO(synk): optional fp8(e4m3) weight path with per-column scales for v7x.

    # Grid order (N, M): M innermost => each W column block stays resident for
    # the whole M sweep; the weight streams from HBM exactly once.
    return pl.pallas_call(
        functools.partial(_one_layer_act_kernel, activation=activation),
        out_shape=jax.ShapeDtypeStruct((n, out_dim), out_dtype),
        grid_spec=pltpu.PrefetchScalarGridSpec(
            num_scalar_prefetch=0,
            grid=(grid_n, grid_m),
            in_specs=[
                pl.BlockSpec((tile_m, in_dim), lambda j, i: (i, 0)),        # x tile
                pl.BlockSpec((in_dim, tile_n), lambda j, i: (0, j),         # W^T block
                             **wb_kwargs),
                pl.BlockSpec((1, tile_n), lambda j, i: (0, j),              # bias block
                             **wb_kwargs),
            ],
            out_specs=pl.BlockSpec((tile_m, tile_n), lambda j, i: (i, j)),
        ),
        compiler_params=pltpu.CompilerParams(
            dimension_semantics=("parallel", "parallel"),
            vmem_limit_bytes=vmem_limit),
        cost_estimate=cost,
    )(x, w_t, bias2d)


# -----------------------------------------------------------------------------
# Module wrapper (matches the PyTorch OneLayerActivation forward semantics)
# -----------------------------------------------------------------------------
class OneLayerActivation:
    """Pallas port of the PyTorch OneLayerActivation (nn.Linear + activation)."""

    def __init__(self, in_dim, out_dim, bias=True, activation="swish", *,
                 key=None, compute_dtype=jnp.bfloat16, tile_m=None):
        if key is None:
            key = jax.random.PRNGKey(0)
        k_w, k_b = jax.random.split(key)
        bound = 1.0 / (in_dim ** 0.5)
        # Master params in f32, PyTorch nn.Linear layout ([out_dim, in_dim]).
        self.weight = jax.random.uniform(k_w, (out_dim, in_dim), jnp.float32,
                                         -bound, bound)
        self.bias = (jax.random.uniform(k_b, (out_dim,), jnp.float32, -bound, bound)
                     if bias else None)
        self.in_dim, self.out_dim = in_dim, out_dim
        self.activation = activation
        self.tile_m = tile_m
        self.compute_dtype = compute_dtype

        # One-time layout prep (outside the hot path): transpose to
        # [in_dim, out_dim], zero-pad out_dim to a lane multiple of 128, cast
        # the weight to the MXU compute dtype; bias stays f32 for the epilogue.
        out_padded = _round_up(out_dim, 128)
        w_t = self.weight.T.astype(compute_dtype)
        b = self.bias if self.bias is not None else jnp.zeros((out_dim,), jnp.float32)
        b = b.astype(jnp.float32).reshape(1, out_dim)
        if out_padded != out_dim:
            w_t = jnp.pad(w_t, ((0, 0), (0, out_padded - out_dim)))
            b = jnp.pad(b, ((0, 0), (0, out_padded - out_dim)))
        self._w_t = w_t
        self._b2 = b

    def __call__(self, x):
        out_dtype = x.dtype
        lead = x.shape[:-1]
        x2 = x.reshape(-1, self.in_dim)
        # Cast activations to the MXU compute dtype once at the call boundary.
        if x2.dtype != self.compute_dtype:
            x2 = x2.astype(self.compute_dtype)
        y = linear_activation_pallas(
            x2, self._w_t, self._b2, self.out_dim,
            activation=self.activation, out_dtype=out_dtype, tile_m=self.tile_m)
        return y.reshape(*lead, self.out_dim)

    def reference(self, x):
        """Plain-JAX f32 reference matching the PyTorch forward."""
        y = x @ self.weight.T
        if self.bias is not None:
            y = y + self.bias
        act = self.activation
        if act in ("swish", "silu"):
            return y * jax.nn.sigmoid(y)
        if act == "relu":
            return jnp.maximum(y, 0.0)
        if act == "sigmoid":
            return jax.nn.sigmoid(y)
        return y


if __name__ == "__main__":
    key = jax.random.PRNGKey(0)
    k_params, k_x = jax.random.split(key)

    # Small shapes consistent with the module: N=96 rows, in_dim=32, out_dim=64
    # (weight lane-padded to 128 inside the wrapper), activation='swish',
    # bias=True.  tile_m=64 forces a 2-step inner-M grid with a ragged last
    # block, exercising the masked-edge stores on both axes.
    N, in_dim, out_dim = 96, 32, 64
    layer = OneLayerActivation(in_dim, out_dim, bias=True, activation="swish",
                               key=k_params, tile_m=64)
    x = jax.random.normal(k_x, (N, in_dim), dtype=jnp.float32)

    y = jax.block_until_ready(layer(x))

    ref = layer.reference(x)
    assert y.shape == (N, out_dim)
    assert y.dtype == x.dtype
    max_err = float(jnp.max(jnp.abs(y - ref)))
    # bf16 MXU operands (x and W) with f32 accumulation: loose-but-safe tolerance.
    assert jnp.allclose(y, ref, atol=3e-2, rtol=3e-2), (
        f"mismatch vs reference (max abs err={max_err})")

    print("KERNEL_OK")
</pallas_src>

<mosaic_0001>
module attributes {stable_mosaic.version = 11 : i64} {
  func.func @_one_layer_act_kernel(%arg0: i32, %arg1: i32, %arg2: memref<64x32xbf16, #tpu.memory_space<vmem>>, %arg3: memref<32x128xbf16, #tpu.memory_space<vmem>>, %arg4: memref<1x128xf32, #tpu.memory_space<vmem>>, %arg5: memref<64x128xf32, #tpu.memory_space<vmem>>) attributes {dimension_semantics = [#tpu.dimension_semantics<parallel>, #tpu.dimension_semantics<parallel>], iteration_bounds = array<i64: 1, 2>, scalar_prefetch = 0 : i64, scratch_operands = 0 : i64, tpu.core_type = #tpu.core_type<tc>, window_params = [{transform_indices = @transform_0, window_bounds = array<i64: 64, 32>}, {transform_indices = @transform_1, window_bounds = array<i64: 32, 128>}, {transform_indices = @transform_2, window_bounds = array<i64: 1, 128>}, {transform_indices = @transform_3, window_bounds = array<i64: 64, 128>}]} {
    %c0 = arith.constant 0 : index
    %c0_0 = arith.constant 0 : index
    %0 = vector.load %arg2[%c0, %c0_0] : memref<64x32xbf16, #tpu.memory_space<vmem>>, vector<64x32xbf16>
    %c0_1 = arith.constant 0 : index
    %c0_2 = arith.constant 0 : index
    %1 = vector.load %arg3[%c0_1, %c0_2] : memref<32x128xbf16, #tpu.memory_space<vmem>>, vector<32x128xbf16>
    %cst = arith.constant dense<0.000000e+00> : vector<64x128xf32>
    %2 = tpu.matmul %0, %1, %cst {dimension_numbers = #tpu.dot_dimension_numbers<[1], [0], [0], [1], [0, 0, 1, 1], [], []>} : vector<64x32xbf16>, vector<32x128xbf16>, vector<64x128xf32> -> vector<64x128xf32>
    %c0_3 = arith.constant 0 : index
    %c0_4 = arith.constant 0 : index
    %3 = vector.load %arg4[%c0_3, %c0_4] : memref<1x128xf32, #tpu.memory_space<vmem>>, vector<1x128xf32>
    %4 = vector.broadcast %3 : vector<1x128xf32> to vector<64x128xf32>
    %5 = arith.addf %2, %4 : vector<64x128xf32>
    %6 = arith.negf %5 : vector<64x128xf32>
    %7 = math.exp %6 : vector<64x128xf32>
    %cst_5 = arith.constant 1.000000e+00 : f32
    %8 = vector.broadcast %cst_5 : f32 to vector<64x128xf32>
    %9 = arith.addf %8, %7 : vector<64x128xf32>
    %10 = arith.divf %8, %9 : vector<64x128xf32>
    %11 = arith.mulf %5, %10 : vector<64x128xf32>
    %c0_6 = arith.constant 0 : index
    %c0_7 = arith.constant 0 : index
    %12 = vector.load %arg5[%c0_6, %c0_7] : memref<64x128xf32, #tpu.memory_space<vmem>>, vector<64x128xf32>
    tpu.vector_store %arg5[%c0_6, %c0_7], %11 {strides = array<i32>} : memref<64x128xf32, #tpu.memory_space<vmem>>, vector<64x128xf32>,
    return
  }
  func.func @transform_0(%arg0: i32, %arg1: i32) -> (i32, i32) {
    %c0_i32 = arith.constant 0 : i32
    %c0_i32_0 = arith.constant 0 : i32
    return %arg1, %c0_i32 : i32, i32
  }
  func.func @transform_1(%arg0: i32, %arg1: i32) -> (i32, i32) {
    %c0_i32 = arith.constant 0 : i32
    %c0_i32_0 = arith.constant 0 : i32
    return %c0_i32, %arg0 : i32, i32
  }
  func.func @transform_2(%arg0: i32, %arg1: i32) -> (i32, i32) {
    %c0_i32 = arith.constant 0 : i32
    %c0_i32_0 = arith.constant 0 : i32
    return %c0_i32, %arg0 : i32, i32
  }
  func.func @transform_3(%arg0: i32, %arg1: i32) -> (i32, i32) {
    %c0_i32 = arith.constant 0 : i32
    return %arg1, %arg0 : i32, i32
  }
}

</mosaic_0001>

<bundles_post_ra>
// kernel: tpu_custom_call.1
= control target key start
LH: loop header
LB: loop body
LE: loop exit
PB: predicated region body
PF: predicated region fallthrough
CT: control target
= control target key end

     0   :  { %s1049_s12 = smov 0   ;;  %s1051_s13 = smov 0   ;;  %s1186_s0 = inlined_call_operand.vmem [shape: bf16[96,32], index: 0, kind: input, shape index: {}]   ;;  %s1187_s1 = inlined_call_operand.vmem [shape: bf16[32,128], index: 1, kind: input, shape index: {}]   ;;  %s1188_s2 = inlined_call_operand.vmem [shape: f32[1,128], index: 2, kind: input, shape index: {}]   ;;  %s1189_s3 = inlined_call_operand.vmem [shape: f32[96,64], index: 3, kind: output, shape index: {}]  }
   0x1   :  { %s1053_s14 = smov 0   ;;  %s1055_s15 = smov 0  }
   0x2   :  { %s1057_s16 = smov 0  }
   0x3 LB: > { %s712_s17 = sadd.s32 4294967295, %s995_s16   ;;  %s22_s18 = sadd.s32 1, %s991_s15  ;;  %s995_s16 = sphi %s1057_s16, %s13_s16   ;;  %s991_s15 = sphi %s1055_s15, %s1197_s15   ;;  %s987_s14 = sphi %s1053_s14, %s1196_s14   ;;  %s983_s13 = sphi %s1051_s13, %s1195_s13   ;;  %s979_s12 = sphi %s1049_s12, %s1194_s12  }
   0x4   : > { %p23_p0 = scmp.ge.s32.totalorder %s22_s18, 2  ;;  %s112_s19 = sadd.s32 1, %s983_s13 }
   0x5   : > { %p122_p1 = scmp.ne.s32.totalorder %s983_s13, %s979_s12  ;;  %p123_p2 = scmp.eq.s32.totalorder %s712_s17, 1 }
   0x6   : > { %s1199_s18 = smov (%p23_p0, %s22_s18), 0  ;;  %p718_p4 = scmp.ge.s32.totalorder %s995_s16, 1 }
   0x7   : > { %p1081_p3 = por %p123_p2, %p122_p1  ;;  %s107_s21 = ssub.s32 %s991_s15, %s1199_s18 }
   0x8   : > { %p177_p5 = scmp.lt.s32.totalorder %s995_s16, 3  ;;  %p110_p6 = scmp.eq.s32.totalorder %s107_s21, 0 }
   0xa   : > { %p178_p7 = pnand %p718_p4, %p177_p5 }
   0xb   : > { %s1090_s22 = scalar_select %p110_p6, %s983_s13, %s112_s19  }
   0xc   : > { %181 = sbr.rel (%p178_p7) target bundleno = 324 (0x144), region = 32  ;;  %v887_v0 = vld [vmem:[%s1187_s1] sm:$0xff] (!%p178_p7)   ;;  %s1096_s25 = sshll.u32 (!%p178_p7), %s987_s14, 3  ;;  %v888_v1 = vld [vmem:[%s1187_s1 + $0x8] sm:$0xff] (!%p178_p7)   ;;  %vm289_vm0 = vcmask (!%p178_p7), 261120  }
   0xd   : > { %p216_p8 = scmp.lt.s32.totalorder (!%p178_p7), %s1096_s25, 11  ;;  %767 = vmatprep.subr.bf16.mxu0 (!%p178_p7), %v887_v0  ;;  %779 = vmatprep.subr.bf16.mxu1 (!%p178_p7), %v887_v0  ;;  %v722_v6 = vld [vmem:[%s1188_s2] ss:$0 sm:$0xff] (!%p178_p7)  ;;  %s208_s8 = sand.u32 (!%p178_p7), 1, %s979_s12  }
   0xe   : > { %768 = vmatpush3.bf16.msra.mxu0 (!%p178_p7), %v887_v0  ;;  %781 = vmatpush3.bf16.msra.mxu1 (!%p178_p7), %v887_v0  ;;  %s719_s9 = sshll.u32 (!%p178_p7), %s208_s8, 6 }
   0xf   : > { %769 = vmatprep.subr.bf16.mxu0 (!%p178_p7), %v888_v1  ;;  %780 = vmatprep.subr.bf16.mxu1 (!%p178_p7), %v888_v1  ;;  %s1110_s10 = scalar_lea.vmem (!%p178_p7), [#allocation2], %s719_s9  }
  0x12   : > { %770 = vmatpush3.bf16.msra.mxu0 (!%p178_p7), %v888_v1  ;;  %782 = vmatpush3.bf16.msra.mxu1 (!%p178_p7), %v888_v1 }
  0x13   : > { %s217_s28 = scalar_select %p216_p8, %s1096_s25, 11 }
  0x14   : > { %s439_s11 = ssub.s32 (%p1081_p3), 12, %s1096_s25  ;;  %s758_s12 = sshll.u32 (%p1081_p3), %s987_s14, 6 }
  0x15   : > { %s721_s29 = sshll.u32 %s217_s28, 2  ;;  %p440_p9 = scmp.lt.s32.totalorder (%p1081_p3), %s439_s11, 8 }
  0x16   : > { %s219_s5 = scalar_lea.vmem %s1186_s0, %s721_s29  ;;  %s1127_s21 = scalar_lea.vmem (%p1081_p3), %s1189_s3, %s758_s12  }
  0x17   : > { %v889_v2 = vld [vmem:[%s219_s5] sm:$0xff]   ;;  %v890_v3 = vld [vmem:[%s219_s5 + $0x10] sm:$0xff]   ;;  %v891_v4 = vld [vmem:[%s219_s5 + $0x8] sm:$0xff]  }
  0x18   : > { %771 = vmatprep.mubr.msk.bf16.mxu0 %vm289_vm0, %v889_v2  ;;  %775 = vmatprep.mubr.msk.bf16.mxu1 %vm289_vm0, %v890_v3  ;;  %v892_v5 = vld [vmem:[%s219_s5 + $0x18] sm:$0xff]  }
  0x19   : > { %772 = vmatmul.mubr.msk.bf16.vlgmr.msra.gmra.mrb[0].mxu0 %vm289_vm0, %v891_v4  ;;  %776 = vmatmul.mubr.msk.bf16.vlgmr.msra.gmra.mrb[0].mxu1 %vm289_vm0, %v892_v5 }
  0xec   : > { %v773_v7 = vpop.f32.mrb[0].mxu0  ;;  %v777_v9 = vpop.f32.mrb[0].mxu1 }
  0xed   : > { %v345_v8 = vadd.f32 %v773_v7, %v722_v6  ;;  %v336_v10 = vpop.f32.mrb[1].mxu0  ;;  %v361_v11 = vadd.f32 %v777_v9, %v722_v6  ;;  %v352_v13 = vpop.f32.mrb[1].mxu1 }
  0xee   : > { %v337_v12 = vadd.f32 %v722_v6, %v336_v10  ;;  %v774_v14 = vpop.f32.mrb[2].mxu0  ;;  %v353_v16 = vadd.f32 %v722_v6, %v352_v13  ;;  %v778_v18 = vpop.f32.mrb[2].mxu1 }
  0xef   : > { %v735_v15 = vmul.f32 -1.442695, %v345_v8  ;;  %v348_v17 = vadd.f32 %v774_v14, %v722_v6  ;;  %v339_v19 = vpop.f32.mrb[3].mxu0  ;;  %v739_v20 = vmul.f32 -1.442695, %v361_v11  ;;  %v364_v22 = vadd.f32 %v778_v18, %v722_v6  ;;  %v355_v24 = vpop.f32.mrb[3].mxu1 }
  0xf0   : > { %v733_v21 = vmul.f32 -1.442695, %v337_v12  ;;  %v340_v23 = vadd.f32 %v722_v6, %v339_v19  ;;  %v737_v25 = vmul.f32 -1.442695, %v353_v16  ;;  %v356_v27 = vadd.f32 %v722_v6, %v355_v24 }
  0xf1   : > { %893 = vpow2.f32 %v735_v15  ;;  %v736_v26 = vmul.f32 -1.442695, %v348_v17  ;;  %v740_v28 = vmul.f32 -1.442695, %v364_v22 }
  0xf2   : > { %895 = vpow2.f32 %v739_v20  ;;  %v734_v29 = vmul.f32 -1.442695, %v340_v23  ;;  %v738_v30 = vmul.f32 -1.442695, %v356_v27 }
  0xf3   : > { %897 = vpow2.f32 %v733_v21 }
  0xf4   : > { %899 = vpow2.f32 %v737_v25 }
  0xf5   : > { %901 = vpow2.f32 %v736_v26 }
  0xf6   : > { %903 = vpow2.f32 %v740_v28 }
  0xf7   : > { %905 = vpow2.f32 %v734_v29 }
  0xf8   : > { %907 = vpow2.f32 %v738_v30 }
  0xfb   : > { %v894_v31 = vpop.eup %893 }
  0xfc   : > { %v896_v32 = vpop.eup %895  ;;  %v393_v33 = vadd.f32 1.0, %v894_v31 }
  0xfd   : > { %v898_v34 = vpop.eup %897  ;;  %v397_v35 = vadd.f32 1.0, %v896_v32 }
  0xfe   : > { %v900_v36 = vpop.eup %899  ;;  %909 = vrcp.f32 %v393_v33  ;;  %v391_v37 = vadd.f32 1.0, %v898_v34 }
  0xff   : > { %v902_v38 = vpop.eup %901  ;;  %911 = vrcp.f32 %v397_v35  ;;  %v395_v39 = vadd.f32 1.0, %v900_v36 }
 0x100   : > { %v904_v40 = vpop.eup %903  ;;  %913 = vrcp.f32 %v391_v37  ;;  %v394_v41 = vadd.f32 1.0, %v902_v38 }
 0x101   : > { %v906_v42 = vpop.eup %905  ;;  %915 = vrcp.f32 %v395_v39  ;;  %v398_v43 = vadd.f32 1.0, %v904_v40 }
 0x102   : > { %v908_v44 = vpop.eup %907  ;;  %917 = vrcp.f32 %v394_v41  ;;  %v392_v45 = vadd.f32 1.0, %v906_v42 }
 0x103   : > { %919 = vrcp.f32 %v398_v43  ;;  %v396_v46 = vadd.f32 1.0, %v908_v44 }
 0x104   : > { %921 = vrcp.f32 %v392_v45 }
 0x105   : > { %923 = vrcp.f32 %v396_v46 }
 0x108   : > { %v910_v47 = vpop.eup %909 }
 0x109   : > { %v912_v48 = vpop.eup %911  ;;  %v417_v49 = vmul.f32 %v910_v47, %v345_v8 }
 0x10a   : > { %v914_v50 = vpop.eup %913  ;;  %v421_v51 = vmul.f32 %v912_v48, %v361_v11 }
 0x10b   : > { %v916_v52 = vpop.eup %915  ;;  %425 = vst [vmem:[%s1110_s10 + $0x10] sm:$0xff] %v417_v49  ;;  %v415_v53 = vmul.f32 %v914_v50, %v337_v12 }
 0x10c   : > { %v918_v54 = vpop.eup %917  ;;  %429 = vst [vmem:[%s1110_s10 + $0x30] sm:$0xff] %v421_v51  ;;  %v419_v55 = vmul.f32 %v916_v52, %v353_v16  ;;  %437 = sbr.rel (!%p1081_p3) target bundleno = 324 (0x144), region = 36 }
 0x10d   : > { %v920_v56 = vpop.eup %919  ;;  %423 = vst [vmem:[%s1110_s10] sm:$0xff] %v415_v53  ;;  %v418_v57 = vmul.f32 %v918_v54, %v348_v17 }
 0x10e   : > { %v922_v58 = vpop.eup %921  ;;  %427 = vst [vmem:[%s1110_s10 + $0x20] sm:$0xff] %v419_v55  ;;  %v422_v59 = vmul.f32 %v920_v56, %v364_v22 }
 0x10f   : > { %v924_v60 = vpop.eup %923  ;;  %426 = vst [vmem:[%s1110_s10 + $0x18] sm:$0xff] %v418_v57  ;;  %v416_v61 = vmul.f32 %v922_v58, %v340_v23 }
 0x110   : > { %430 = vst [vmem:[%s1110_s10 + $0x38] sm:$0xff] %v422_v59  ;;  %v420_v62 = vmul.f32 %v924_v60, %v356_v27 }
 0x111   : > { %424 = vst [vmem:[%s1110_s10 + $0x8] sm:$0xff] %v416_v61 }
 0x112   : > { %428 = vst [vmem:[%s1110_s10 + $0x28] sm:$0xff] %v420_v62 }
 0x113   : > { %s1201_s11 = smov (!%p440_p9, %s439_s11), 8 }
 0x114   : > { %s743_s23 = sshll.u32 %s1201_s11, 7 }
 0x115   : > { %p746_p10 = scmp.eq.s32.totalorder %s743_s23, 0 }
 0x116   : > { %s1133_s24 = sshrl.u32 (!%p746_p10), %s1201_s11, 3 }
 0x117   : > { %449 = sbr.rel (%p746_p10) target bundleno = 324 (0x144), region = 40  ;;  %p747_p11 = scmp.le.s32.totalorder (!%p746_p10), %s1133_s24, 0 }
 0x11e   : > { %642 = sbr.rel (%p747_p11) target bundleno = 303 (0x12f), region = 122  ;;  %s1191_s14 = smov (!%p747_p11), %s1127_s21 }
 0x11f   : > { %s1192_s20 = smov (!%p747_p11), %s1110_s10  ;;  %s1142_s25 = smov (!%p747_p11), 0  }
 0x120   : > { %s1144_s26 = smov (!%p747_p11), 0  }
 0x125 LB: >> { %v525_v63 = vld [vmem:[%s1003_s20] sm:$0xff]  ;;  %v527_v0 = vld [vmem:[%s1003_s20 + $0x8] sm:$0xff]  ;;  %v529_v1 = vld [vmem:[%s1003_s20 + $0x10] sm:$0xff]  ;;  %s541_s27 = sadd.s32 1, %s1007_s25  ;;  %s519_s26 = sadd.s32 1, %s1011_s26   ;;  %s1011_s26 = sphi %s1144_s26, %s519_s26   ;;  %s1007_s25 = sphi %s1142_s25, %s1193_s25   ;;  %s1003_s20 = sphi %s1192_s20, %s546_s20   ;;  %s999_s14 = sphi %s1191_s14, %s547_s14  }
 0x126   : >> { %526 = vst [vmem:[%s999_s14] sm:$0xff] %v525_v63  ;;  %528 = vst [vmem:[%s999_s14 + $0x8] sm:$0xff] %v527_v0  ;;  %v531_v2 = vld [vmem:[%s1003_s20 + $0x18] sm:$0xff]  ;;  %v533_v3 = vld [vmem:[%s1003_s20 + $0x20] sm:$0xff]  ;;  %p542_p12 = scmp.ge.s32.totalorder %s541_s27, %s1133_s24  ;;  %p518_p13 = scmp.ge.s32.totalorder %s519_s26, %s1133_s24 }
 0x127   : >> { %530 = vst [vmem:[%s999_s14 + $0x10] sm:$0xff] %v529_v1  ;;  %v535_v4 = vld [vmem:[%s1003_s20 + $0x28] sm:$0xff]  ;;  %532 = vst [vmem:[%s999_s14 + $0x18] sm:$0xff] %v531_v2  ;;  %v537_v5 = vld [vmem:[%s1003_s20 + $0x30] sm:$0xff] }
 0x128   : >> { %534 = vst [vmem:[%s999_s14 + $0x20] sm:$0xff] %v533_v3  ;;  %536 = vst [vmem:[%s999_s14 + $0x28] sm:$0xff] %v535_v4  ;;  %v539_v6 = vld [vmem:[%s1003_s20 + $0x38] sm:$0xff]  ;;  %s1203_s27 = smov (%p542_p12, %s541_s27), 0  ;;  %521 = sbr.rel (!%p518_p13) target bundleno = 293 (0x125), region = 128 }
 0x129   : >> { %538 = vst [vmem:[%s999_s14 + $0x30] sm:$0xff] %v537_v5  ;;  %540 = vst [vmem:[%s999_s14 + $0x38] sm:$0xff] %v539_v6  ;;  %s748_s28 = sshll.u32 %s1203_s27, 6  ;;  %s1193_s25 = smov %s1203_s27 }
 0x12a   : >> { %s546_s20 = scalar_lea.vmem %s1110_s10, %s748_s28 [#allocation2]   ;;  %s547_s14 = scalar_lea.vmem %s1127_s21, %s748_s28  }
 0x12f PF: > { %s1163_s29 = sand.u32 7, %s1201_s11   ;;  %s759_s30 = sshll.u32 %s1133_s24, 6 }
 0x130   : > { %s552_s4 = scalar_lea.vmem %s1110_s10, %s759_s30 [#allocation2]   ;;  %s554_s5 = scalar_lea.vmem %s1127_s21, %s759_s30  }
 0x131   : > { %p753_p0 = scmp.le.s32.totalorder %s1163_s29, 0 }
 0x132   : > { %s1013_s6 = smov (!%p753_p0), %s554_s5   ;;  %s1017_s7 = smov (!%p753_p0), %s552_s4  }
 0x133   : > { %656 = sbr.rel (%p753_p0) target bundleno = 324 (0x144), region = 133  ;;  %s1021_s8 = smov (!%p753_p0), 0  }
 0x134   : > { %s1025_s9 = smov (!%p753_p0), 0  }
 0x13a LB: >> { %v564_v7 = vld [vmem:[%s1019_s7] sm:$0xff]  ;;  %s566_s11 = sadd.s32 1, %s1023_s8  ;;  %s558_s9 = sadd.s32 1, %s1027_s9   ;;  %s1027_s9 = sphi %s1025_s9, %s558_s9   ;;  %s1023_s8 = sphi %s1021_s8, %s1022_s8   ;;  %s1019_s7 = sphi %s1017_s7, %s571_s7   ;;  %s1015_s6 = sphi %s1013_s6, %s572_s6  }
 0x13b   : >> { %565 = vst [vmem:[%s1015_s6] sm:$0xff] %v564_v7  ;;  %p567_p1 = scmp.ge.s32.totalorder %s566_s11, %s1163_s29  ;;  %p557_p2 = scmp.ge.s32.totalorder %s558_s9, %s1163_s29 }
 0x13d   : >> { %s1205_s11 = smov (%p567_p1, %s566_s11), 0  ;;  %560 = sbr.rel (!%p557_p2) target bundleno = 314 (0x13a), region = 139 }
 0x13e   : >> { %s754_s10 = sshll.u32 %s1205_s11, 3  ;;  %s1022_s8 = smov %s1205_s11  }
 0x13f   : >> { %s571_s7 = scalar_lea.vmem %s552_s4, %s754_s10 [#allocation2]   ;;  %s572_s6 = scalar_lea.vmem %s554_s5, %s754_s10  }
 0x144 PF: > { %s13_s16 = sadd.s32 1, %s995_s16   ;;  %s1194_s12 = smov %s983_s13 }
 0x145   : > { %p10_p3 = scmp.ge.s32.totalorder %s13_s16, 4   ;;  %s1195_s13 = smov %s1090_s22 }
 0x146   : > { %s1196_s14 = smov %s991_s15  ;;  %s1197_s15 = smov %s1199_s18 }
 0x147   :  { %12 = sbr.rel (!%p10_p3) target bundleno = 3 (0x3), region = 150 }

</bundles_post_ra>
